<compile_context>
chip_gen: v5e
topology: v5e:2x2
jax: 0.10.0
libtpu: 0.0.40
codegen_flags: <defaults>
</compile_context>

<pallas_src>
import functools
import math

import jax
import jax.numpy as jnp
from jax import lax
from jax.experimental import pallas as pl
from jax.experimental.pallas import tpu as pltpu

_BLOCK_BUDGET_BYTES = 6 * 1024 * 1024       # target size for one input block
_PIPELINE_VMEM_BYTES = 20 * 1024 * 1024     # 2x inputs + 2x outputs + scratch
_VMEM_LIMIT_BYTES = 32 * 1024 * 1024        # legal on v5e / v6e / v7x


def _cdiv(a, b):
    return -(-a // b)


def _round_up(n, m):
    return _cdiv(n, m) * m


def _round_down(n, m):
    return (n // m) * m


def _sublane_pack(itemsize):
    # Packed-sublane granule: (8,128) for 4-byte, (16,128) bf16/fp16, (32,128) int8/fp8.
    return {4: 8, 2: 16, 1: 32}.get(itemsize, 8)


# ---------------------------------------------------------------------------
# Fast path: reduce the middle axis of an (A, R, B) slab.  B (kept) on lanes,
# R (reduced) on sublanes + innermost grid axis, f32 accumulator scratch,
# several A rows per block.
# ---------------------------------------------------------------------------
def _pool_middle_kernel(x_ref, o_ref, acc_ref, *, r_total, inv_r, need_mask):
    r = pl.program_id(2)
    last_r = pl.num_programs(2) - 1

    @pl.when(r == 0)
    def _():
        acc_ref[...] = jnp.zeros_like(acc_ref)

    x = x_ref[...].astype(jnp.float32)                 # (tile_a, tile_r, tile_b)

    if need_mask:
        # Partial R blocks only occur on the final r step: keep the steady-state
        # loop to plain load + sublane-reduce + add (no iota / where / extra vregs).
        @pl.when(r < last_r)
        def _():
            acc_ref[...] += jnp.sum(x, axis=1, keepdims=True)

        @pl.when(r == last_r)
        def _():
            ridx = lax.broadcasted_iota(jnp.int32, x.shape, 1) + r * x.shape[1]
            xm = jnp.where(ridx < r_total, x, 0.0)
            acc_ref[...] += jnp.sum(xm, axis=1, keepdims=True)
    else:
        acc_ref[...] += jnp.sum(x, axis=1, keepdims=True)

    @pl.when(r == last_r)
    def _():
        o_ref[...] = (acc_ref[...] * inv_r).astype(o_ref.dtype)


def _middle_tiles(A, R, B, itemsize):
    pack = _sublane_pack(itemsize)
    pad_r = lambda n: _round_up(n, pack)
    pad_b = lambda n: _round_up(n, 128)

    # Padded VMEM cost of one A row at (tile_r=R, tile_b=B):
    #   2x input block + 2x output block (middle dim pads to 8 sublanes) + f32 acc.
    per_a = (2 * pad_r(R) * pad_b(B) * itemsize
             + 2 * 8 * pad_b(B) * itemsize
             + 8 * pad_b(B) * 4)
    if per_a <= _PIPELINE_VMEM_BYTES:
        # Whole (R, B) slab fits: pack multiple A rows per block so blocks stay
        # large (and fully contiguous in HBM) even when R is small.
        tile_r, tile_b = R, B
        tile_a = max(1, min(A, _PIPELINE_VMEM_BYTES // per_a))
    else:
        tile_a = 1
        per_lane = 2 * pad_r(R) * itemsize + 2 * 8 * itemsize + 8 * 4
        b_fit = _PIPELINE_VMEM_BYTES // per_lane
        if b_fit >= 128:
            # Keep the whole reduction in a single grid step; tile the lane dim.
            tile_r = R
            tile_b = min(_round_down(b_fit, 128), B)
        else:
            # R is huge: tile the reduction axis as well.
            tile_b = B if B <= 128 else 128
            r_fit = _BLOCK_BUDGET_BYTES // (pad_b(tile_b) * itemsize)
            tile_r = min(R, max(pack, _round_down(r_fit, pack)))

    # v7x has 2 TensorCores: keep the "parallel" grid extent >= 2 when possible
    # (harmless extra grid step on single-TC v5e/v6e).
    if _cdiv(A, tile_a) * _cdiv(B, tile_b) == 1:
        if A >= 2:
            tile_a = _cdiv(A, 2)
        elif B >= 256:
            half_b = _round_up(_cdiv(B, 2), 128)
            if half_b < B:
                tile_b = half_b
    return tile_a, tile_r, tile_b


def _pool_middle(x3):
    A, R, B = (int(s) for s in x3.shape)
    itemsize = x3.dtype.itemsize
    tile_a, tile_r, tile_b = _middle_tiles(A, R, B, itemsize)
    need_mask = (R % tile_r) != 0

    grid = (_cdiv(A, tile_a), _cdiv(B, tile_b), _cdiv(R, tile_r))
    kernel = functools.partial(
        _pool_middle_kernel, r_total=R, inv_r=1.0 / R, need_mask=need_mask)

    return pl.pallas_call(
        kernel,
        out_shape=jax.ShapeDtypeStruct((A, 1, B), x3.dtype),
        grid=grid,
        in_specs=[pl.BlockSpec((tile_a, tile_r, tile_b),
                               lambda a, b, r: (a, r, b))],
        out_specs=pl.BlockSpec((tile_a, 1, tile_b), lambda a, b, r: (a, 0, b)),
        scratch_shapes=[pltpu.VMEM((tile_a, 1, tile_b), jnp.float32)],
        compiler_params=pltpu.CompilerParams(
            dimension_semantics=("parallel", "parallel", "arbitrary"),
            vmem_limit_bytes=_VMEM_LIMIT_BYTES),
        cost_estimate=pl.CostEstimate(
            flops=A * R * B,
            transcendentals=0,
            bytes_accessed=(A * R * B + A * B) * itemsize),
    )(x3)


# ---------------------------------------------------------------------------
# Fallback path: reduce the last axis of a (K, R) slab (reduced axes include
# the trailing axis, or are non-contiguous).  R (reduced) on lanes, tiled over
# both K and R, f32 accumulator scratch.
# ---------------------------------------------------------------------------
def _pool_last_kernel(x_ref, o_ref, acc_ref, *, r_total, inv_r, need_mask):
    r = pl.program_id(1)
    last_r = pl.num_programs(1) - 1

    @pl.when(r == 0)
    def _():
        acc_ref[...] = jnp.zeros_like(acc_ref)

    x = x_ref[...].astype(jnp.float32)                 # (tile_k, tile_r)

    if need_mask:
        @pl.when(r < last_r)
        def _():
            acc_ref[...] += jnp.sum(x, axis=-1, keepdims=True)

        @pl.when(r == last_r)
        def _():
            cidx = lax.broadcasted_iota(jnp.int32, x.shape, 1) + r * x.shape[1]
            xm = jnp.where(cidx < r_total, x, 0.0)
            acc_ref[...] += jnp.sum(xm, axis=-1, keepdims=True)
    else:
        acc_ref[...] += jnp.sum(x, axis=-1, keepdims=True)

    @pl.when(r == last_r)
    def _():
        o_ref[...] = (acc_ref[...] * inv_r).astype(o_ref.dtype)


def _last_tiles(K, R, itemsize):
    pack = _sublane_pack(itemsize)
    pad_k = lambda n: _round_up(n, pack)
    pad_r = lambda n: _round_up(n, 128)

    # Padded VMEM cost per kept row: 2x input block + 2x (tile_k, 1) output
    # block (single lane pads to 128) + f32 acc.
    per_k = 2 * pad_r(R) * itemsize + 2 * 128 * itemsize + 128 * 4
    if pack * per_k <= _PIPELINE_VMEM_BYTES:
        # Keep the whole contiguous reduced axis in one grid step (long
        # contiguous per-row DMA, single accumulator pass); tile the kept rows.
        tile_r = R
        tile_k = min(K, max(pack, _round_down(_PIPELINE_VMEM_BYTES // per_k, pack)))
    else:
        # R is huge: minimal row count, tile the reduced lane axis.
        tile_k = K if K <= pack else pack
        r_fit = _BLOCK_BUDGET_BYTES // (pad_k(tile_k) * itemsize)
        tile_r = min(R, max(128, _round_down(r_fit, 128)))

    # v7x megacore: keep the parallel (K) grid extent >= 2 when possible.
    if _cdiv(K, tile_k) == 1 and K > pack:
        half_k = _round_up(_cdiv(K, 2), pack)
        if half_k < K:
            tile_k = half_k
    return tile_k, tile_r


def _pool_last(x2):
    K, R = (int(s) for s in x2.shape)
    itemsize = x2.dtype.itemsize
    tile_k, tile_r = _last_tiles(K, R, itemsize)
    need_mask = (R % tile_r) != 0

    grid = (_cdiv(K, tile_k), _cdiv(R, tile_r))
    kernel = functools.partial(
        _pool_last_kernel, r_total=R, inv_r=1.0 / R, need_mask=need_mask)

    # NOTE: the (tile_k, 1) output block is narrow (masked partial stores on
    # writeback), but output traffic is only 1/R of the input traffic here, so
    # we keep the layout that is guaranteed to lower rather than transposing
    # the accumulator into a lane-dense (1, tile_k) row at finalize.
    return pl.pallas_call(
        kernel,
        out_shape=jax.ShapeDtypeStruct((K, 1), x2.dtype),
        grid=grid,
        in_specs=[pl.BlockSpec((tile_k, tile_r), lambda k, r: (k, r))],
        out_specs=pl.BlockSpec((tile_k, 1), lambda k, r: (k, 0)),
        scratch_shapes=[pltpu.VMEM((tile_k, 1), jnp.float32)],
        compiler_params=pltpu.CompilerParams(
            dimension_semantics=("parallel", "arbitrary"),
            vmem_limit_bytes=_VMEM_LIMIT_BYTES),
        cost_estimate=pl.CostEstimate(
            flops=K * R,
            transcendentals=0,
            bytes_accessed=(K * R + K) * itemsize),
    )(x2)


@functools.partial(jax.jit, static_argnames=("dim",))
def global_avg_pool(x, dim=1):
    """Pallas equivalent of GlobalAvgPool(dim).forward(x) == x.mean(dim)."""
    dims = (dim,) if isinstance(dim, int) else tuple(dim)
    dims = tuple(sorted(d % x.ndim for d in dims))
    kept = tuple(a for a in range(x.ndim) if a not in dims)
    if not kept:
        # TODO(synk): full reduction over every axis is left to XLA directly.
        return jnp.mean(x)

    kept_shape = tuple(int(x.shape[a]) for a in kept)
    R = math.prod(int(x.shape[d]) for d in dims)

    contiguous = dims == tuple(range(dims[0], dims[0] + len(dims)))
    if contiguous and dims[-1] != x.ndim - 1:
        # Reduced axes form a contiguous middle block: free reshape, no copy.
        A = math.prod(int(s) for s in x.shape[:dims[0]])
        B = math.prod(int(s) for s in x.shape[dims[-1] + 1:])
        out = _pool_middle(x.reshape(A, R, B))            # (A, 1, B)
        return out.reshape(kept_shape)

    # Reduced axes include the last axis (or are non-contiguous): move them
    # last (transpose only when actually needed) and lane-reduce.
    perm = kept + dims
    if perm != tuple(range(x.ndim)):
        x = jnp.transpose(x, perm)
    K = math.prod(kept_shape)
    out = _pool_last(x.reshape(K, R))                     # (K, 1)
    return out.reshape(kept_shape)


if __name__ == "__main__":
    key = jax.random.PRNGKey(0)
    # NCHW input: batch=2, channels=4, spatial=16x16  (GlobalAvgPool default dim=1)
    x = jax.random.normal(key, (2, 4, 16, 16), dtype=jnp.float32)

    # Fast (no-transpose, middle-reduce) path: dim=1.
    y = jax.block_until_ready(global_avg_pool(x, dim=1))
    ref = jnp.mean(x, axis=1)
    assert y.shape == ref.shape == (2, 16, 16)
    assert jnp.allclose(y, ref, atol=1e-5, rtol=1e-5)

    # Trailing-axis (lane-reduce) path: dim=(2, 3).
    y2 = jax.block_until_ready(global_avg_pool(x, dim=(2, 3)))
    ref2 = jnp.mean(x, axis=(2, 3))
    assert y2.shape == ref2.shape == (2, 4)
    assert jnp.allclose(y2, ref2, atol=1e-5, rtol=1e-5)

    # Narrow-dtype path (exercises dtype-aware sublane packing + f32 accumulation).
    xb = x.astype(jnp.bfloat16)
    y3 = jax.block_until_ready(global_avg_pool(xb, dim=1)).astype(jnp.float32)
    ref3 = jnp.mean(xb.astype(jnp.float32), axis=1)
    assert y3.shape == ref3.shape == (2, 16, 16)
    assert jnp.allclose(y3, ref3, atol=0.05, rtol=0.05)

    print("KERNEL_OK")
</pallas_src>

<mosaic_0001>
module attributes {stable_mosaic.version = 11 : i64} {
  func.func @_pool_middle_kernel(%arg0: i32, %arg1: i32, %arg2: i32, %arg3: memref<1x4x256xf32, #tpu.memory_space<vmem>>, %arg4: memref<1x1x256xf32, #tpu.memory_space<vmem>>, %arg5: memref<1x1x256xf32, #tpu.memory_space<vmem>>) attributes {dimension_semantics = [#tpu.dimension_semantics<parallel>, #tpu.dimension_semantics<parallel>, #tpu.dimension_semantics<arbitrary>], iteration_bounds = array<i64: 2, 1, 1>, scalar_prefetch = 0 : i64, scratch_operands = 1 : i64, tpu.core_type = #tpu.core_type<tc>, window_params = [{transform_indices = @transform_0, window_bounds = array<i64: 1, 4, 256>}, {transform_indices = @transform_1, window_bounds = array<i64: 1, 1, 256>}]} {
    %c0_i32 = arith.constant 0 : i32
    %0 = arith.cmpi eq, %arg2, %c0_i32 : i32
    %1 = arith.extui %0 : i1 to i32
    %c0_i32_0 = arith.constant 0 : i32
    %2 = arith.cmpi ne, %1, %c0_i32_0 : i32
    scf.if %2 {
      %cst_11 = arith.constant 0.000000e+00 : f32
      %12 = vector.broadcast %cst_11 : f32 to vector<1x1x256xf32>
      %c0_12 = arith.constant 0 : index
      %c0_13 = arith.constant 0 : index
      %c0_14 = arith.constant 0 : index
      %13 = vector.load %arg5[%c0_12, %c0_13, %c0_14] : memref<1x1x256xf32, #tpu.memory_space<vmem>>, vector<1x1x256xf32>
      tpu.vector_store %arg5[%c0_12, %c0_13, %c0_14], %12 {strides = array<i32>} : memref<1x1x256xf32, #tpu.memory_space<vmem>>, vector<1x1x256xf32>,
    } else {
    }
    %c0 = arith.constant 0 : index
    %c0_1 = arith.constant 0 : index
    %c0_2 = arith.constant 0 : index
    %3 = vector.load %arg3[%c0, %c0_1, %c0_2] : memref<1x4x256xf32, #tpu.memory_space<vmem>>, vector<1x4x256xf32>
    %c0_3 = arith.constant 0 : index
    %c0_4 = arith.constant 0 : index
    %c0_5 = arith.constant 0 : index
    %4 = vector.load %arg5[%c0_3, %c0_4, %c0_5] : memref<1x1x256xf32, #tpu.memory_space<vmem>>, vector<1x1x256xf32>
    %cst = arith.constant dense<0.000000e+00> : vector<1x256xf32>
    %5 = vector.multi_reduction <add>, %3, %cst [1] : vector<1x4x256xf32> to vector<1x256xf32>
    %6 = vector.shape_cast %5 : vector<1x256xf32> to vector<1x1x256xf32>
    %7 = arith.addf %4, %6 : vector<1x1x256xf32>
    %c0_6 = arith.constant 0 : index
    %c0_7 = arith.constant 0 : index
    %c0_8 = arith.constant 0 : index
    %8 = vector.load %arg5[%c0_6, %c0_7, %c0_8] : memref<1x1x256xf32, #tpu.memory_space<vmem>>, vector<1x1x256xf32>
    tpu.vector_store %arg5[%c0_6, %c0_7, %c0_8], %7 {strides = array<i32>} : memref<1x1x256xf32, #tpu.memory_space<vmem>>, vector<1x1x256xf32>,
    %c0_i32_9 = arith.constant 0 : i32
    %9 = arith.cmpi eq, %arg2, %c0_i32_9 : i32
    %10 = arith.extui %9 : i1 to i32
    %c0_i32_10 = arith.constant 0 : i32
    %11 = arith.cmpi ne, %10, %c0_i32_10 : i32
    scf.if %11 {
      %c0_11 = arith.constant 0 : index
      %c0_12 = arith.constant 0 : index
      %c0_13 = arith.constant 0 : index
      %12 = vector.load %arg5[%c0_11, %c0_12, %c0_13] : memref<1x1x256xf32, #tpu.memory_space<vmem>>, vector<1x1x256xf32>
      %cst_14 = arith.constant 2.500000e-01 : f32
      %13 = vector.broadcast %cst_14 : f32 to vector<1x1x256xf32>
      %14 = arith.mulf %12, %13 : vector<1x1x256xf32>
      %c0_15 = arith.constant 0 : index
      %c0_16 = arith.constant 0 : index
      %c0_17 = arith.constant 0 : index
      %15 = vector.load %arg4[%c0_15, %c0_16, %c0_17] : memref<1x1x256xf32, #tpu.memory_space<vmem>>, vector<1x1x256xf32>
      tpu.vector_store %arg4[%c0_15, %c0_16, %c0_17], %14 {strides = array<i32>} : memref<1x1x256xf32, #tpu.memory_space<vmem>>, vector<1x1x256xf32>,
    } else {
    }
    return
  }
  func.func @transform_0(%arg0: i32, %arg1: i32, %arg2: i32) -> (i32, i32, i32) {
    %c0_i32 = arith.constant 0 : i32
    return %arg0, %arg2, %arg1 : i32, i32, i32
  }
  func.func @transform_1(%arg0: i32, %arg1: i32, %arg2: i32) -> (i32, i32, i32) {
    %c0_i32 = arith.constant 0 : i32
    %c0_i32_0 = arith.constant 0 : i32
    return %arg0, %c0_i32, %arg1 : i32, i32, i32
  }
}

</mosaic_0001>

<bundles_post_ra>
// kernel: global_avg_pool.1
= control target key start
LH: loop header
LB: loop body
LE: loop exit
PB: predicated region body
PF: predicated region fallthrough
CT: control target
= control target key end

     0   :  { %s386_s6 = smov 0   ;;  %s388_s7 = smov 0   ;;  %s433_s0 = inlined_call_operand.vmem [shape: f32[2,4,256], index: 0, kind: input, shape index: {}]   ;;  %s434_s1 = inlined_call_operand.vmem [shape: f32[2,1,256], index: 1, kind: output, shape index: {}]  }
   0x1   :  { %s390_s8 = smov 0  }
   0x2 LB: > { %s30_s9 = sadd.s32 1, %s369_s7  ;;  %p319_p0 = scmp.ge.s32.totalorder %s373_s8, 1  ;;  %s373_s8 = sphi %s390_s8, %s11_s8   ;;  %s369_s7 = sphi %s388_s7, %s438_s7   ;;  %s365_s6 = sphi %s386_s6, %s437_s6  }
   0x3   : > { %p32_p1 = scmp.ge.s32.totalorder %s30_s9, 2  ;;  %p121_p2 = scmp.lt.s32.totalorder %s373_s8, 3 }
   0x5   : > { %s440_s9 = smov (%p32_p1, %s30_s9), 0  ;;  %p122_p3 = pnand %p319_p0, %p121_p2 }
   0x6   : > { %p153_p4 = scmp.lt.s32.totalorder (!%p122_p3), %s365_s6, 1 }
   0x7   : > { %125 = sbr.rel (%p122_p3) target bundleno = 53 (0x35), region = 24 }
   0xc   : > { %v179_v0 = vlaneseq  ;;  %s442_s6 = smov (!%p153_p4, %s365_s6), 1  ;;  %v375_v2 = vmov 0.0   ;;  %vm192_vm1 = vcmask 1043456   ;;  %vm210_vm2 = vcmask 1040384  }
   0xd   : > { %s325_s10 = sshll.u32 %s442_s6, 3  ;;  %s322_s14 = sshll.u32 %s442_s6, 1 }
   0xe   : > { %vm406_vm0 = vcmp.lt.s32.totalorder %v179_v0, 256  ;;  %s164_s13 = scalar_lea.vmem %s433_s0, %s325_s10  ;;  %s173_s17 = scalar_lea.vmem %s434_s1, %s322_s14 }
   0xf   : > { %183 = vst.msk [vmem:[#allocation2] sm:$0x3] %vm406_vm0, %v375_v2  ;;  %v184_v3 = vld [vmem:[%s164_s13] sm:$0xff] }
  0x10   : > { %187 = vst [vmem:[#allocation1] ss:$2 sm:$0xff] %v184_v3 }
  0x16   : > { %v185_v19 = vld [vmem:[#allocation2] sm:$0x3] }
  0x17   : > { %v188_v4 = vld.sshfl [vmem:[#allocation1] sm:$0xff pattern:$0x75316420]  ;;  %v189_v5 = vld.sshfl [vmem:[#allocation1 + $0x8] sm:$0xff pattern:$0x75316420] }
  0x18   : > { %v193_v6 = vsel %vm192_vm1, %v188_v4, 0.0  ;;  %v200_v7 = vsel %vm192_vm1, %v189_v5, 0.0 }
  0x19   : > { %v194_v8 = vrot.slane %v193_v6, 4  ;;  %v201_v9 = vrot.slane %v200_v7, 4 }
  0x1b   : > { %v195_v10 = vadd.f32 %v194_v8, %v193_v6  ;;  %v202_v11 = vadd.f32 %v201_v9, %v200_v7 }
  0x1d   : > { %v196_v12 = vrot.slane %v195_v10, 2  ;;  %v203_v13 = vrot.slane %v202_v11, 2 }
  0x1f   : > { %v197_v14 = vadd.f32 %v196_v12, %v195_v10  ;;  %v204_v15 = vadd.f32 %v203_v13, %v202_v11 }
  0x21   : > { %v198_v16 = vrot.slane %v197_v14, 1  ;;  %v205_v17 = vrot.slane %v204_v15, 1 }
  0x23   : > { %v206_v18 = vadd.f32 %v205_v17, %v204_v15  ;;  %v199_v20 = vadd.f32 %v198_v16, %v197_v14 }
  0x25   : > { %v209_v21 = vrot.slane %v206_v18, 7 }
  0x27   : > { %v211_v22 = vsel %vm210_vm2, %v199_v20, %v209_v21 }
  0x28   : > { %v213_v23 = vadd.f32 %v211_v22, %v185_v19 }
  0x2a   : > { %218 = vst.msk [vmem:[#allocation2] sm:$0x3] %vm406_vm0, %v213_v23 }
  0x31   : > { %v222_v24 = vld [vmem:[#allocation2] sm:$0x3] }
  0x32   : > { %v223_v25 = vmul.f32 0.25, %v222_v24 }
  0x34   : > { %224 = vst.msk [vmem:[%s173_s17] sm:$0x3] %vm406_vm0, %v223_v25 }
  0x35 PF: > { %s11_s8 = sadd.s32 1, %s373_s8   ;;  %s437_s6 = smov %s369_s7 }
  0x36   : > { %p8_p5 = scmp.ge.s32.totalorder %s11_s8, 4   ;;  %s438_s7 = smov %s440_s9 }
  0x38   :  { %10 = sbr.rel (!%p8_p5) target bundleno = 2 (0x2), region = 62 }

</bundles_post_ra>
